<compile_context>
chip_gen: v5e
topology: v5e:2x2
jax: 0.10.0
libtpu: 0.0.40
codegen_flags: <defaults>
</compile_context>

<pallas_src>
import jax
import jax.numpy as jnp
import numpy as np
from jax.experimental import pallas as pl
from jax.experimental.pallas import tpu as pltpu


def _hflip_kernel(x_ref, o_ref):
    """Reverse the lane (last) axis of a (TM, W) block.

    Wrapper guarantees W % 128 == 0, or W is a power of two (< 128).
      * lanes inside each 128-lane group (or inside the whole row when W < 128)
        are reversed with a log2(period) butterfly: 2 XLU lane-rotates + 1 VPU
        select per stage, mask is a single (1, W) row broadcast over sublanes;
      * the ORDER of the 128-lane groups is reversed with static, tile-aligned
        stores into the output ref (pure vreg moves, no MXU anywhere).
    """
    x = x_ref[...]
    w = x.shape[-1]
    period = 128 if w % 128 == 0 else w          # wrapper guarantees pow2 here
    lane = jax.lax.broadcasted_iota(jnp.int32, (1, w), 1)
    s = 1
    while s < period:                            # unrolled at trace time
        a = pltpu.roll(x, shift=s, axis=1)
        b = pltpu.roll(x, shift=w - s, axis=1)
        # One-row probe of the roll direction: exactly one of a/b holds
        # x[lane ^ s] at every lane; the rolled one-row iota says which.
        ia = pltpu.roll(lane, shift=s, axis=1)
        x = jnp.where(ia == (lane ^ s), a, b)    # (1, w) mask broadcast on rows
        s <<= 1
    if w <= 128:
        o_ref[...] = x
    else:
        g = w // 128
        for k in range(g):                       # mirrored, tile-aligned stores
            o_ref[:, k * 128:(k + 1) * 128] = x[:, (g - 1 - k) * 128:(g - k) * 128]


def _pick_tm(rows, lane_elems, itemsize, target_bytes=2 * 1024 * 1024):
    """Row-tile size: largest multiple-of-8 divisor of `rows` whose block stays
    under target_bytes, preferring >=2 grid steps (v7x megacore).  Falls back
    to the full extent (always legal) or a masked non-dividing tile."""
    row_bytes = max(1, lane_elems * itemsize)
    cap = max(8, min(rows, target_bytes // row_bytes))
    divs = [c for c in range(8, cap + 1, 8) if rows % c == 0]
    if divs:
        two_step = [c for c in divs if rows // c >= 2]
        return (two_step or divs)[-1]
    if rows <= cap:
        return rows                              # full extent block
    return int(cap - (cap % 8)) or 8             # non-dividing tile; cdiv grid


def _hflip_block_pallas(x2d):
    """x2d: (R, W) with W % 128 == 0 or W a power of two; reverses last axis."""
    R, W = x2d.shape
    itemsize = x2d.dtype.itemsize
    tm = _pick_tm(R, W, itemsize)
    grid = (pl.cdiv(R, tm),)
    return pl.pallas_call(
        _hflip_kernel,
        out_shape=jax.ShapeDtypeStruct((R, W), x2d.dtype),
        grid_spec=pltpu.PrefetchScalarGridSpec(
            num_scalar_prefetch=0,
            grid=grid,
            in_specs=[pl.BlockSpec((tm, W), lambda i: (i, 0))],
            out_specs=pl.BlockSpec((tm, W), lambda i: (i, 0)),
        ),
        # In-place capable: per grid step the input row-block is fully read
        # before the same row-block of the output is written, and different
        # steps touch disjoint rows, so aliasing is safe.  XLA copies first
        # when the caller does not donate the buffer.
        input_output_aliases={0: 0},
        cost_estimate=pl.CostEstimate(
            flops=0, transcendentals=0, bytes_accessed=2 * R * W * itemsize),
        compiler_params=pltpu.CompilerParams(
            dimension_semantics=("parallel",),
            # ~2 MiB blocks: 2x double-buffered in/out + butterfly temporaries
            # stay well under 32 MiB (fits v5e/v6e/v7x scoped VMEM).
            vmem_limit_bytes=32 * 1024 * 1024,
        ),
    )(x2d)


def hflip_last_axis_pallas(x2d):
    """Reverse the last axis of a 2-D array with a Pallas TPU kernel."""
    R, W = x2d.shape
    if W % 128 == 0 or (W & (W - 1)) == 0:
        return _hflip_block_pallas(x2d)
    # General width (neither multiple of 128 nor power of two, e.g. SSD 300):
    # left-pad to the next multiple of 128 so reversing the padded row leaves
    # the valid data exactly in the first W lanes.  Exact (pure data
    # movement), at the cost of one extra pad copy of the image.
    wp = ((W + 127) // 128) * 128
    xp = jnp.pad(x2d, ((0, 0), (wp - W, 0)))
    return _hflip_block_pallas(xp)[:, :W]


def _flip_boxes_lr(boxes, width):
    """xyxy pixel boxes, flip_lr against image width."""
    x1, y1, x2, y2 = boxes[:, 0], boxes[:, 1], boxes[:, 2], boxes[:, 3]
    return jnp.stack([width - x2, y1, width - x1, y2], axis=1)


def custom_random_horizontal_flip(img, boxes, key, p=0.5):
    """Forward pass of CustomRandomHorizontalFlip.

    img:   (B, C, H, W) float32
    boxes: (N, 4) float32 xyxy pixel coords (stand-in for list[SsdDetection])
    Returns (img_out, boxes_out, flipped_flag).

    Note: callers that do not need the un-flipped image should jit this with
    donate_argnums for `img` so neither the lax.cond identity branch nor the
    aliased pallas output forces a defensive HBM copy.
    """
    B, C, H, W = img.shape
    flipped = jax.random.uniform(key, (1,)) < p          # == torch.rand(1) < p

    def _flip(operands):
        im, bx = operands
        im2 = hflip_last_axis_pallas(im.reshape(B * C * H, W)).reshape(B, C, H, W)
        return im2, _flip_boxes_lr(bx, float(W))

    def _identity(operands):
        return operands

    # No-flip bypass: skip the kernel when not flipping.
    out_img, out_boxes = jax.lax.cond(flipped[0], _flip, _identity, (img, boxes))
    return out_img, out_boxes, flipped


if __name__ == "__main__":
    key = jax.random.PRNGKey(0)
    k_img, k_box, k_flip, k_wide, k_odd = jax.random.split(key, 5)

    B, C, H, W = 2, 4, 16, 16
    img = jax.random.normal(k_img, (B, C, H, W), dtype=jnp.float32)
    boxes = jax.random.uniform(k_box, (5, 4), dtype=jnp.float32) * W

    # References are materialized BEFORE running any aliased kernel.
    ref_flip_img = jax.block_until_ready(jnp.flip(img, axis=-1))
    ref_flip_boxes = jax.block_until_ready(_flip_boxes_lr(boxes, float(W)))

    # 1) Direct kernel check (W=16, power-of-two full-extent lane block).
    out1 = hflip_last_axis_pallas(img.reshape(B * C * H, W)).reshape(B, C, H, W)
    out1 = jax.block_until_ready(out1)
    np.testing.assert_array_equal(np.asarray(out1), np.asarray(ref_flip_img))

    # 2) Wide path: W multiple of 128 (full-width block, mirrored group stores).
    xw = jax.random.normal(k_wide, (16, 256), dtype=jnp.float32)
    ref_w = jax.block_until_ready(jnp.flip(xw, axis=-1))
    outw = jax.block_until_ready(hflip_last_axis_pallas(xw))
    np.testing.assert_array_equal(np.asarray(outw), np.asarray(ref_w))

    # 3) General width (not pow2, not multiple of 128): pad-to-128 fallback.
    xo = jax.random.normal(k_odd, (16, 20), dtype=jnp.float32)
    ref_o = jax.block_until_ready(jnp.flip(xo, axis=-1))
    outo = jax.block_until_ready(hflip_last_axis_pallas(xo))
    np.testing.assert_array_equal(np.asarray(outo), np.asarray(ref_o))

    # 4) Full module forward (random flip decision + lax.cond bypass).
    out_img, out_boxes, flipped = custom_random_horizontal_flip(
        img, boxes, k_flip, p=0.5)
    out_img = jax.block_until_ready(out_img)
    out_boxes = jax.block_until_ready(out_boxes)

    do_flip = bool(np.asarray(flipped)[0])
    ref_img = ref_flip_img if do_flip else img
    ref_boxes = ref_flip_boxes if do_flip else boxes
    np.testing.assert_array_equal(np.asarray(out_img), np.asarray(ref_img))
    np.testing.assert_allclose(np.asarray(out_boxes), np.asarray(ref_boxes),
                               rtol=1e-6, atol=1e-6)
    print("KERNEL_OK")
</pallas_src>

<mosaic_0001>
module attributes {stable_mosaic.version = 11 : i64} {
  func.func @_hflip_kernel(%arg0: i32, %arg1: memref<64x16xf32, #tpu.memory_space<vmem>>, %arg2: memref<64x16xf32, #tpu.memory_space<vmem>>) attributes {dimension_semantics = [#tpu.dimension_semantics<parallel>], iteration_bounds = array<i64: 2>, scalar_prefetch = 0 : i64, scratch_operands = 0 : i64, tpu.core_type = #tpu.core_type<tc>, window_params = [{transform_indices = @transform_0, window_bounds = array<i64: 64, 16>}, {transform_indices = @transform_1, window_bounds = array<i64: 64, 16>}]} {
    %c0 = arith.constant 0 : index
    %c0_0 = arith.constant 0 : index
    %0 = vector.load %arg1[%c0, %c0_0] : memref<64x16xf32, #tpu.memory_space<vmem>>, vector<64x16xf32>
    %1 = tpu.iota {dimensions = array<i32: 1>} : vector<1x16xi32>
    %c1_i32 = arith.constant 1 : i32
    %2 = tpu.dynamic_rotate %0 by %c1_i32 dim 1 : vector<64x16xf32>, i32 -> vector<64x16xf32>
    %c15_i32 = arith.constant 15 : i32
    %3 = tpu.dynamic_rotate %0 by %c15_i32 dim 1 : vector<64x16xf32>, i32 -> vector<64x16xf32>
    %c1_i32_1 = arith.constant 1 : i32
    %4 = tpu.dynamic_rotate %1 by %c1_i32_1 dim 1 : vector<1x16xi32>, i32 -> vector<1x16xi32>
    %c1_i32_2 = arith.constant 1 : i32
    %5 = vector.broadcast %c1_i32_2 : i32 to vector<1x16xi32>
    %6 = arith.xori %1, %5 : vector<1x16xi32>
    %7 = arith.cmpi eq, %4, %6 : vector<1x16xi32>
    %8 = vector.shape_cast %7 : vector<1x16xi1> to vector<1x16xi1>
    %9 = vector.broadcast %8 : vector<1x16xi1> to vector<64x16xi1>
    %10 = arith.select %9, %2, %3 : vector<64x16xi1>, vector<64x16xf32>
    %c2_i32 = arith.constant 2 : i32
    %11 = tpu.dynamic_rotate %10 by %c2_i32 dim 1 : vector<64x16xf32>, i32 -> vector<64x16xf32>
    %c14_i32 = arith.constant 14 : i32
    %12 = tpu.dynamic_rotate %10 by %c14_i32 dim 1 : vector<64x16xf32>, i32 -> vector<64x16xf32>
    %c2_i32_3 = arith.constant 2 : i32
    %13 = tpu.dynamic_rotate %1 by %c2_i32_3 dim 1 : vector<1x16xi32>, i32 -> vector<1x16xi32>
    %c2_i32_4 = arith.constant 2 : i32
    %14 = vector.broadcast %c2_i32_4 : i32 to vector<1x16xi32>
    %15 = arith.xori %1, %14 : vector<1x16xi32>
    %16 = arith.cmpi eq, %13, %15 : vector<1x16xi32>
    %17 = vector.shape_cast %16 : vector<1x16xi1> to vector<1x16xi1>
    %18 = vector.broadcast %17 : vector<1x16xi1> to vector<64x16xi1>
    %19 = arith.select %18, %11, %12 : vector<64x16xi1>, vector<64x16xf32>
    %c4_i32 = arith.constant 4 : i32
    %20 = tpu.dynamic_rotate %19 by %c4_i32 dim 1 : vector<64x16xf32>, i32 -> vector<64x16xf32>
    %c12_i32 = arith.constant 12 : i32
    %21 = tpu.dynamic_rotate %19 by %c12_i32 dim 1 : vector<64x16xf32>, i32 -> vector<64x16xf32>
    %c4_i32_5 = arith.constant 4 : i32
    %22 = tpu.dynamic_rotate %1 by %c4_i32_5 dim 1 : vector<1x16xi32>, i32 -> vector<1x16xi32>
    %c4_i32_6 = arith.constant 4 : i32
    %23 = vector.broadcast %c4_i32_6 : i32 to vector<1x16xi32>
    %24 = arith.xori %1, %23 : vector<1x16xi32>
    %25 = arith.cmpi eq, %22, %24 : vector<1x16xi32>
    %26 = vector.shape_cast %25 : vector<1x16xi1> to vector<1x16xi1>
    %27 = vector.broadcast %26 : vector<1x16xi1> to vector<64x16xi1>
    %28 = arith.select %27, %20, %21 : vector<64x16xi1>, vector<64x16xf32>
    %c8_i32 = arith.constant 8 : i32
    %29 = tpu.dynamic_rotate %28 by %c8_i32 dim 1 : vector<64x16xf32>, i32 -> vector<64x16xf32>
    %c8_i32_7 = arith.constant 8 : i32
    %30 = tpu.dynamic_rotate %28 by %c8_i32_7 dim 1 : vector<64x16xf32>, i32 -> vector<64x16xf32>
    %c8_i32_8 = arith.constant 8 : i32
    %31 = tpu.dynamic_rotate %1 by %c8_i32_8 dim 1 : vector<1x16xi32>, i32 -> vector<1x16xi32>
    %c8_i32_9 = arith.constant 8 : i32
    %32 = vector.broadcast %c8_i32_9 : i32 to vector<1x16xi32>
    %33 = arith.xori %1, %32 : vector<1x16xi32>
    %34 = arith.cmpi eq, %31, %33 : vector<1x16xi32>
    %35 = vector.shape_cast %34 : vector<1x16xi1> to vector<1x16xi1>
    %36 = vector.broadcast %35 : vector<1x16xi1> to vector<64x16xi1>
    %37 = arith.select %36, %29, %30 : vector<64x16xi1>, vector<64x16xf32>
    %c0_10 = arith.constant 0 : index
    %c0_11 = arith.constant 0 : index
    %38 = vector.load %arg2[%c0_10, %c0_11] : memref<64x16xf32, #tpu.memory_space<vmem>>, vector<64x16xf32>
    tpu.vector_store %arg2[%c0_10, %c0_11], %37 {strides = array<i32>} : memref<64x16xf32, #tpu.memory_space<vmem>>, vector<64x16xf32>,
    return
  }
  func.func @transform_0(%arg0: i32) -> (i32, i32) {
    %c0_i32 = arith.constant 0 : i32
    %c0_i32_0 = arith.constant 0 : i32
    return %arg0, %c0_i32 : i32, i32
  }
  func.func @transform_1(%arg0: i32) -> (i32, i32) {
    %c0_i32 = arith.constant 0 : i32
    %c0_i32_0 = arith.constant 0 : i32
    return %arg0, %c0_i32 : i32, i32
  }
}

</mosaic_0001>

<bundles_post_ra>
// kernel: tpu_custom_call.1
= control target key start
LH: loop header
LB: loop body
LE: loop exit
PB: predicated region body
PF: predicated region fallthrough
CT: control target
= control target key end

     0   :  { %s720_s6 = smov 0   ;;  %s983_s0 = inlined_call_operand.vmem [shape: f32[128,16], index: 0, kind: input, shape index: {}, may-alias: {0,1}]   ;;  %s984_s1 = inlined_call_operand.vmem [shape: f32[128,16], index: 1, kind: output, shape index: {}, may-alias: {0,1}]  }
   0x1 LB: > { %s663_s7 = sadd.s32 4294967295, %s698_s6   ;;  %p667_p0 = scmp.ge.s32.totalorder %s698_s6, 1  ;;  %s698_s6 = sphi %s720_s6, %s11_s6  }
   0x2   : > { %p88_p1 = scmp.lt.s32.totalorder %s698_s6, 3 }
   0x4   : > { %p89_p2 = pnand %p667_p0, %p88_p1 }
   0x5   : > { %s668_s8 = sshll.u32 (!%p89_p2), %s663_s7, 3  ;;  %s700_s13 = smov (!%p89_p2), 16  }
   0x6   : > { %92 = sbr.rel (%p89_p2) target bundleno = 1696 (0x6a0), region = 24  ;;  %p109_p3 = scmp.lt.s32.totalorder (!%p89_p2), %s668_s8, 15 }
   0x7   : > { %s701_s14 = smov (!%p89_p2), 15   ;;  %s702_s15 = smov (!%p89_p2), 14  }
   0x8   : > { %s704_s16 = smov (!%p89_p2), 113   ;;  %s705_s17 = smov (!%p89_p2), 12  }
   0x9   : > { %s706_s18 = smov (!%p89_p2), 114   ;;  %s707_s19 = smov (!%p89_p2), 8  }
   0xa   : > { %s708_s20 = smov (!%p89_p2), 116   ;;  %s709_s21 = smov (!%p89_p2), 120  }
   0xb   : > { %s992_s8 = smov (!%p109_p3, %s668_s8), 15  ;;  %v128_v6 = vlaneseq  ;;  %vm130_vm0 = vcmask 1047680   ;;  %v703_v48 = vmov 0   ;;  %vm598_vm7 = vcmask 130048  }
   0xc   : > { %s669_s9 = sshll.u32 %s992_s8, 3 }
   0xd   : > { %s112_s12 = scalar_lea.vmem %s983_s0, %s669_s9  ;;  %v745_v9 = vand.u32 127, %v128_v6  ;;  %s118_s24 = scalar_lea.vmem %s984_s1, %s669_s9 }
   0xe   : > { %v122_v0 = vld [vmem:[%s112_s12 + $0x10] sm:$0xff]  ;;  %v120_v1 = vld [vmem:[%s112_s12] sm:$0xff]  ;;  %v123_v3 = vld [vmem:[%s112_s12 + $0x18] sm:$0xff] }
   0xf   : > { %137 = vrot.lane.b32.xlu1 %v122_v0, %s700_s13  ;;  %131 = vrot.lane.b32.xlu0 %v120_v1, %s700_s13  ;;  %v738_v2 = vld [vmem:[%s112_s12 + $0x20] sm:$0xff]  ;;  %v121_v4 = vld [vmem:[%s112_s12 + $0x8] sm:$0xff]  ;;  %v185_v25 = vxor.u32 1, %v745_v9 }
  0x10   : > { %143 = vrot.lane.b32.xlu2 %v738_v2, %s700_s13  ;;  %v125_v5 = vld [vmem:[%s112_s12 + $0x28] sm:$0xff]  ;;  %v126_v7 = vld [vmem:[%s112_s12 + $0x30] sm:$0xff]  ;;  %v127_v8 = vld [vmem:[%s112_s12 + $0x38] sm:$0xff] }
  0x17   : > { %140 = vrot.lane.b32.xlu1 %v123_v3, %s700_s13  ;;  %134 = vrot.lane.b32.xlu0 %v121_v4, %s700_s13 }
  0x18   : > { %146 = vrot.lane.b32.xlu2 %v125_v5, %s700_s13 }
  0x1f   : > { %149 = vrot.lane.b32.xlu0 %v126_v7, %s700_s13  ;;  %152 = vrot.lane.b32.xlu1 %v127_v8, %s700_s13 }
  0x20   : > { %179 = vrot.lane.b32.xlu2 %v745_v9, %s700_s13 }
  0x6a   : > { %v144_v10 = vpop.permute.xlu2 %143 }
  0x6b   : > { %v145_v22 = vsel %vm130_vm0, %v144_v10, %v738_v2 }
  0x72   : > { %v147_v15 = vpop.permute.xlu2 %146 }
  0x73   : > { %v148_v16 = vsel %vm130_vm0, %v147_v15, %v125_v5 }
  0x7a   : > { %v180_v27 = vpop.permute.xlu2 %179 }
  0x7b   : > { %v181_v28 = vsel %vm130_vm0, %v180_v27, %v745_v9 }
  0x81   : > { %v138_v11 = vpop.permute.xlu1 %137  ;;  %v132_v12 = vpop.permute.xlu0 %131 }
  0x82   : > { %v139_v13 = vsel %vm130_vm0, %v138_v11, %v122_v0  ;;  %v133_v14 = vsel %vm130_vm0, %v132_v12, %v120_v1 }
  0x83   : > { %159 = vrot.lane.b32.xlu2 %v139_v13, %s700_s13  ;;  %155 = vrot.lane.b32.xlu0 %v133_v14, %s700_s13 }
  0x89   : > { %v141_v17 = vpop.permute.xlu1 %140  ;;  %v135_v18 = vpop.permute.xlu0 %134 }
  0x8a   : > { %v142_v19 = vsel %vm130_vm0, %v141_v17, %v123_v3  ;;  %v136_v20 = vsel %vm130_vm0, %v135_v18, %v121_v4  ;;  %v312_v17 = vxor.u32 2, %v745_v9 }
  0x8b   : > { %165 = vrot.lane.b32.xlu2 %v148_v16, %s700_s13  ;;  %161 = vrot.lane.b32.xlu0 %v142_v19, %s700_s13 }
  0x8c   : > { %157 = vrot.lane.b32.xlu1 %v136_v20, %s700_s13 }
  0x91   : > { %v150_v21 = vpop.permute.xlu0 %149  ;;  %v153_v24 = vpop.permute.xlu1 %152 }
  0x92   : > { %v151_v23 = vsel %vm130_vm0, %v150_v21, %v126_v7  ;;  %v154_v26 = vsel %vm130_vm0, %v153_v24, %v127_v8 }
  0x93   : > { %167 = vrot.lane.b32.xlu0 %v151_v23, %s700_s13  ;;  %182 = vrot.lane.b32.xlu2 %v181_v28, %s700_s13 }
  0x94   : > { %163 = vrot.lane.b32.xlu1 %v145_v22, %s700_s13 }
  0x9b   : > { %186 = vrot.lane.b32.xlu0 %v185_v25, %s701_s14 }
  0x9c   : > { %169 = vrot.lane.b32.xlu1 %v154_v26, %s700_s13 }
  0xdd   : > { %v160_v29 = vpop.permute.xlu2 %159 }
  0xde   : > { %v173_v30 = vsel %vm130_vm0, %v160_v29, %v122_v0 }
  0xdf   : > { %204 = vrot.lane.b32.xlu0 %v173_v30, %s702_s15 }
  0xe5   : > { %v166_v31 = vpop.permute.xlu2 %165 }
  0xe6   : > { %v176_v32 = vsel %vm130_vm0, %v166_v31, %v125_v5 }
  0xe7   : > { %210 = vrot.lane.b32.xlu0 %v176_v32, %s702_s15 }
  0xed   : > { %v183_v45 = vpop.permute.xlu2 %182 }
  0xee   : > { %v791_v46 = vsel %vm130_vm0, %v183_v45, %v745_v9 }
  0xf5   : > { %v156_v33 = vpop.permute.xlu0 %155 }
  0xf6   : > { %v171_v34 = vsel %vm130_vm0, %v156_v33, %v120_v1 }
  0xf7   : > { %200 = vrot.lane.b32.xlu1 %v171_v34, %s702_s15 }
  0xfd   : > { %v162_v35 = vpop.permute.xlu0 %161 }
  0xfe   : > { %v158_v36 = vpop.permute.xlu1 %157  ;;  %v174_v37 = vsel %vm130_vm0, %v162_v35, %v123_v3 }
  0xff   : > { %v172_v38 = vsel %vm130_vm0, %v158_v36, %v121_v4  ;;  %206 = vrot.lane.b32.xlu1 %v174_v37, %s702_s15 }
 0x100   : > { %202 = vrot.lane.b32.xlu2 %v172_v38, %s702_s15 }
 0x105   : > { %v168_v39 = vpop.permute.xlu0 %167 }
 0x106   : > { %v164_v40 = vpop.permute.xlu1 %163  ;;  %v177_v41 = vsel %vm130_vm0, %v168_v39, %v126_v7 }
 0x107   : > { %v175_v42 = vsel %vm130_vm0, %v164_v40, %v738_v2  ;;  %212 = vrot.lane.b32.xlu1 %v177_v41, %s702_s15 }
 0x108   : > { %208 = vrot.lane.b32.xlu2 %v175_v42, %s702_s15 }
 0x10d   : > { %v187_v47 = vpop.permute.xlu0 %186 }
 0x10e   : > { %v170_v43 = vpop.permute.xlu1 %169  ;;  %vm188_vm1 = vcmp.eq.s32.totalorder %v791_v46, %v187_v47 }
 0x10f   : > { %v178_v44 = vsel %vm130_vm0, %v170_v43, %v127_v8  ;;  %v189_v49 = vsel %vm188_vm1, 1, %v703_v48 }
 0x110   : > { %214 = vrot.lane.b32.xlu2 %v178_v44, %s702_s15  ;;  %v190_v50 = vperm.slane %v189_v49, 0 }
 0x112   : > { %vm795_vm2 = vcmp.eq.s32.totalorder %v190_v50, 1 }
 0x151   : > { %v205_v52 = vpop.permute.xlu0 %204 }
 0x152   : > { %v226_v53 = vsel %vm795_vm2, %v173_v30, %v205_v52 }
 0x153   : > { %244 = vrot.lane.b32.xlu2 %v226_v53, %s704_s16 }
 0x159   : > { %v211_v54 = vpop.permute.xlu0 %210 }
 0x15a   : > { %v203_v55 = vpop.permute.xlu2 %202  ;;  %v229_v56 = vsel %vm795_vm2, %v176_v32, %v211_v54 }
 0x15b   : > { %v225_v57 = vsel %vm795_vm2, %v172_v38, %v203_v55  ;;  %250 = vrot.lane.b32.xlu2 %v229_v56, %s704_s16 }
 0x15c   : > { %242 = vrot.lane.b32.xlu1 %v225_v57, %s704_s16 }
 0x162   : > { %v209_v58 = vpop.permute.xlu2 %208 }
 0x163   : > { %v228_v59 = vsel %vm795_vm2, %v175_v42, %v209_v58 }
 0x164   : > { %248 = vrot.lane.b32.xlu1 %v228_v59, %s704_s16 }
 0x169   : > { %v201_v60 = vpop.permute.xlu1 %200 }
 0x16a   : > { %v215_v61 = vpop.permute.xlu2 %214  ;;  %v224_v62 = vsel %vm795_vm2, %v171_v34, %v201_v60 }
 0x16b   : > { %v231_v63 = vsel %vm795_vm2, %v178_v44, %v215_v61  ;;  %240 = vrot.lane.b32.xlu0 %v224_v62, %s704_s16 }
 0x16c   : > { %254 = vrot.lane.b32.xlu1 %v231_v63, %s704_s16 }
 0x171   : > { %v207_v0 = vpop.permute.xlu1 %206 }
 0x172   : > { %v227_v1 = vsel %vm795_vm2, %v174_v37, %v207_v0 }
 0x173   : > { %246 = vrot.lane.b32.xlu0 %v227_v1, %s704_s16 }
 0x179   : > { %v213_v2 = vpop.permute.xlu1 %212 }
 0x17a   : > { %v230_v3 = vsel %vm795_vm2, %v177_v41, %v213_v2 }
 0x17b   : > { %252 = vrot.lane.b32.xlu0 %v230_v3, %s704_s16 }
 0x1ad   : > { %v245_v4 = vpop.permute.xlu2 %244 }
 0x1ae   : > { %270 = vrot.lane.b32.xlu1 %v245_v4, %s700_s13 }
 0x1b5   : > { %v251_v5 = vpop.permute.xlu2 %250 }
 0x1b6   : > { %279 = vrot.lane.b32.xlu1 %v251_v5, %s700_s13 }
 0x1ce   : > { %v243_v6 = vpop.permute.xlu1 %242 }
 0x1cf   : > { %267 = vrot.lane.b32.xlu0 %v243_v6, %s700_s13 }
 0x1d6   : > { %v249_v7 = vpop.permute.xlu1 %248 }
 0x1d7   : > { %276 = vrot.lane.b32.xlu0 %v249_v7, %s700_s13 }
 0x1dd   : > { %v241_v8 = vpop.permute.xlu0 %240 }
 0x1de   : > { %v255_v10 = vpop.permute.xlu1 %254  ;;  %264 = vrot.lane.b32.xlu2 %v241_v8, %s700_s13 }
 0x1df   : > { %285 = vrot.lane.b32.xlu0 %v255_v10, %s700_s13 }
 0x1e5   : > { %v247_v11 = vpop.permute.xlu0 %246 }
 0x1e6   : > { %273 = vrot.lane.b32.xlu2 %v247_v11, %s700_s13 }
 0x1ed   : > { %v253_v12 = vpop.permute.xlu0 %252 }
 0x1ee   : > { %282 = vrot.lane.b32.xlu2 %v253_v12, %s700_s13 }
 0x220   : > { %v271_v13 = vpop.permute.xlu1 %270 }
 0x221   : > { %v272_v14 = vsel %vm130_vm0, %v271_v13, %v245_v4 }
 0x222   : > { %292 = vrot.lane.b32.xlu0 %v272_v14, %s700_s13 }
 0x228   : > { %v280_v15 = vpop.permute.xlu1 %279 }
 0x229   : > { %v281_v16 = vsel %vm130_vm0, %v280_v15, %v251_v5 }
 0x22a   : > { %298 = vrot.lane.b32.xlu0 %v281_v16, %s700_s13 }
 0x232   : > { %313 = vrot.lane.b32.xlu0 %v312_v17, %s702_s15 }
 0x238   : > { %v265_v18 = vpop.permute.xlu2 %264 }
 0x239   : > { %v266_v19 = vsel %vm130_vm0, %v265_v18, %v241_v8 }
 0x23a   : > { %288 = vrot.lane.b32.xlu1 %v266_v19, %s700_s13  ;;  %v439_v19 = vxor.u32 4, %v745_v9 }
 0x240   : > { %v274_v20 = vpop.permute.xlu2 %273 }
 0x241   : > { %v268_v21 = vpop.permute.xlu0 %267  ;;  %v275_v22 = vsel %vm130_vm0, %v274_v20, %v247_v11 }
 0x242   : > { %294 = vrot.lane.b32.xlu1 %v275_v22, %s700_s13  ;;  %v269_v23 = vsel %vm130_vm0, %v268_v21, %v243_v6 }
 0x243   : > { %290 = vrot.lane.b32.xlu2 %v269_v23, %s700_s13 }
 0x248   : > { %v283_v24 = vpop.permute.xlu2 %282 }
 0x249   : > { %v277_v25 = vpop.permute.xlu0 %276  ;;  %v284_v26 = vsel %vm130_vm0, %v283_v24, %v253_v12 }
 0x24a   : > { %300 = vrot.lane.b32.xlu1 %v284_v26, %s700_s13  ;;  %v278_v27 = vsel %vm130_vm0, %v277_v25, %v249_v7 }
 0x24b   : > { %296 = vrot.lane.b32.xlu2 %v278_v27, %s700_s13 }
 0x251   : > { %v286_v28 = vpop.permute.xlu0 %285 }
 0x252   : > { %v287_v29 = vsel %vm130_vm0, %v286_v28, %v255_v10 }
 0x253   : > { %302 = vrot.lane.b32.xlu2 %v287_v29, %s700_s13 }
 0x294   : > { %v293_v30 = vpop.permute.xlu0 %292 }
 0x295   : > { %v306_v31 = vsel %vm130_vm0, %v293_v30, %v245_v4 }
 0x296   : > { %331 = vrot.lane.b32.xlu0 %v306_v31, %s705_s17 }
 0x29c   : > { %v299_v32 = vpop.permute.xlu0 %298 }
 0x29d   : > { %v291_v33 = vpop.permute.xlu2 %290  ;;  %v309_v34 = vsel %vm130_vm0, %v299_v32, %v251_v5 }
 0x29e   : > { %v305_v35 = vsel %vm130_vm0, %v291_v33, %v243_v6  ;;  %337 = vrot.lane.b32.xlu0 %v309_v34, %s705_s17 }
 0x29f   : > { %329 = vrot.lane.b32.xlu2 %v305_v35, %s705_s17 }
 0x2a4   : > { %v314_v47 = vpop.permute.xlu0 %313 }
 0x2a5   : > { %v297_v36 = vpop.permute.xlu2 %296  ;;  %vm315_vm3 = vcmp.eq.s32.totalorder %v791_v46, %v314_v47 }
 0x2a6   : > { %v308_v37 = vsel %vm130_vm0, %v297_v36, %v249_v7  ;;  %v316_v49 = vsel %vm315_vm3, 1, %v703_v48 }
 0x2a7   : > { %335 = vrot.lane.b32.xlu2 %v308_v37, %s705_s17  ;;  %v317_v50 = vperm.slane %v316_v49, 0 }
 0x2a9   : > { %vm859_vm4 = vcmp.eq.s32.totalorder %v317_v50, 1 }
 0x2ac   : > { %v289_v38 = vpop.permute.xlu1 %288 }
 0x2ad   : > { %v303_v39 = vpop.permute.xlu2 %302  ;;  %v304_v40 = vsel %vm130_vm0, %v289_v38, %v241_v8 }
 0x2ae   : > { %327 = vrot.lane.b32.xlu1 %v304_v40, %s705_s17  ;;  %v311_v41 = vsel %vm130_vm0, %v303_v39, %v255_v10 }
 0x2af   : > { %341 = vrot.lane.b32.xlu2 %v311_v41, %s705_s17 }
 0x2b4   : > { %v295_v42 = vpop.permute.xlu1 %294 }
 0x2b5   : > { %v307_v43 = vsel %vm130_vm0, %v295_v42, %v247_v11 }
 0x2b6   : > { %333 = vrot.lane.b32.xlu1 %v307_v43, %s705_s17 }
 0x2bc   : > { %v301_v44 = vpop.permute.xlu1 %300 }
 0x2bd   : > { %v310_v45 = vsel %vm130_vm0, %v301_v44, %v253_v12 }
 0x2be   : > { %339 = vrot.lane.b32.xlu1 %v310_v45, %s705_s17 }
 0x2f9   : > { %v330_v52 = vpop.permute.xlu2 %329 }
 0x2fa   : > { %v352_v53 = vsel %vm859_vm4, %v305_v35, %v330_v52 }
 0x2fb   : > { %369 = vrot.lane.b32.xlu1 %v352_v53, %s706_s18 }
 0x301   : > { %v336_v54 = vpop.permute.xlu2 %335 }
 0x302   : > { %v355_v55 = vsel %vm859_vm4, %v308_v37, %v336_v54 }
 0x303   : > { %375 = vrot.lane.b32.xlu1 %v355_v55, %s706_s18 }
 0x308   : > { %v332_v56 = vpop.permute.xlu0 %331 }
 0x309   : > { %v342_v57 = vpop.permute.xlu2 %341  ;;  %v353_v58 = vsel %vm859_vm4, %v306_v31, %v332_v56 }
 0x30a   : > { %v358_v59 = vsel %vm859_vm4, %v311_v41, %v342_v57  ;;  %371 = vrot.lane.b32.xlu2 %v353_v58, %s706_s18 }
 0x30b   : > { %381 = vrot.lane.b32.xlu1 %v358_v59, %s706_s18 }
 0x310   : > { %v338_v60 = vpop.permute.xlu0 %337 }
 0x311   : > { %v356_v61 = vsel %vm859_vm4, %v309_v34, %v338_v60 }
 0x312   : > { %377 = vrot.lane.b32.xlu2 %v356_v61, %s706_s18 }
 0x320   : > { %v328_v62 = vpop.permute.xlu1 %327 }
 0x321   : > { %v351_v63 = vsel %vm859_vm4, %v304_v40, %v328_v62 }
 0x322   : > { %367 = vrot.lane.b32.xlu0 %v351_v63, %s706_s18 }
 0x328   : > { %v334_v0 = vpop.permute.xlu1 %333 }
 0x329   : > { %v354_v1 = vsel %vm859_vm4, %v307_v43, %v334_v0 }
 0x32a   : > { %373 = vrot.lane.b32.xlu0 %v354_v1, %s706_s18 }
 0x330   : > { %v340_v2 = vpop.permute.xlu1 %339 }
 0x331   : > { %v357_v3 = vsel %vm859_vm4, %v310_v45, %v340_v2 }
 0x332   : > { %379 = vrot.lane.b32.xlu0 %v357_v3, %s706_s18 }
 0x364   : > { %v372_v4 = vpop.permute.xlu2 %371 }
 0x365   : > { %397 = vrot.lane.b32.xlu1 %v372_v4, %s700_s13 }
 0x36c   : > { %v378_v5 = vpop.permute.xlu2 %377 }
 0x36d   : > { %v370_v6 = vpop.permute.xlu1 %369  ;;  %406 = vrot.lane.b32.xlu1 %v378_v5, %s700_s13 }
 0x36e   : > { %394 = vrot.lane.b32.xlu0 %v370_v6, %s700_s13 }
 0x375   : > { %v376_v7 = vpop.permute.xlu1 %375 }
 0x376   : > { %403 = vrot.lane.b32.xlu0 %v376_v7, %s700_s13 }
 0x37d   : > { %v382_v8 = vpop.permute.xlu1 %381 }
 0x37e   : > { %412 = vrot.lane.b32.xlu0 %v382_v8, %s700_s13 }
 0x394   : > { %v368_v10 = vpop.permute.xlu0 %367 }
 0x395   : > { %391 = vrot.lane.b32.xlu2 %v368_v10, %s700_s13 }
 0x39c   : > { %v374_v11 = vpop.permute.xlu0 %373 }
 0x39d   : > { %400 = vrot.lane.b32.xlu2 %v374_v11, %s700_s13 }
 0x3a4   : > { %v380_v12 = vpop.permute.xlu0 %379 }
 0x3a5   : > { %409 = vrot.lane.b32.xlu2 %v380_v12, %s700_s13 }
 0x3d7   : > { %v398_v13 = vpop.permute.xlu1 %397 }
 0x3d8   : > { %v399_v14 = vsel %vm130_vm0, %v398_v13, %v372_v4 }
 0x3d9   : > { %419 = vrot.lane.b32.xlu0 %v399_v14, %s700_s13 }
 0x3df   : > { %v407_v15 = vpop.permute.xlu1 %406 }
 0x3e0   : > { %v395_v16 = vpop.permute.xlu0 %394  ;;  %v408_v17 = vsel %vm130_vm0, %v407_v15, %v378_v5 }
 0x3e1   : > { %425 = vrot.lane.b32.xlu0 %v408_v17, %s700_s13  ;;  %v396_v18 = vsel %vm130_vm0, %v395_v16, %v370_v6 }
 0x3e2   : > { %417 = vrot.lane.b32.xlu2 %v396_v18, %s700_s13 }
 0x3e8   : > { %v404_v20 = vpop.permute.xlu0 %403 }
 0x3e9   : > { %440 = vrot.lane.b32.xlu0 %v439_v19, %s705_s17  ;;  %v405_v21 = vsel %vm130_vm0, %v404_v20, %v376_v7 }
 0x3ea   : > { %423 = vrot.lane.b32.xlu2 %v405_v21, %s700_s13 }
 0x3ef   : > { %v392_v22 = vpop.permute.xlu2 %391 }
 0x3f0   : > { %v413_v23 = vpop.permute.xlu0 %412  ;;  %v393_v24 = vsel %vm130_vm0, %v392_v22, %v368_v10 }
 0x3f1   : > { %415 = vrot.lane.b32.xlu1 %v393_v24, %s700_s13  ;;  %v414_v25 = vsel %vm130_vm0, %v413_v23, %v382_v8 }
 0x3f2   : > { %429 = vrot.lane.b32.xlu2 %v414_v25, %s700_s13 }
 0x3f7   : > { %v401_v26 = vpop.permute.xlu2 %400 }
 0x3f8   : > { %v402_v9 = vsel %vm130_vm0, %v401_v26, %v374_v11 }
 0x3f9   : > { %421 = vrot.lane.b32.xlu1 %v402_v9, %s700_s13 }
 0x3ff   : > { %v410_v27 = vpop.permute.xlu2 %409 }
 0x400   : > { %v411_v28 = vsel %vm130_vm0, %v410_v27, %v380_v12 }
 0x401   : > { %427 = vrot.lane.b32.xlu1 %v411_v28, %s700_s13 }
 0x43c   : > { %v418_v29 = vpop.permute.xlu2 %417 }
 0x43d   : > { %v432_v30 = vsel %vm130_vm0, %v418_v29, %v370_v6 }
 0x43e   : > { %456 = vrot.lane.b32.xlu2 %v432_v30, %s707_s19 }
 0x444   : > { %v424_v31 = vpop.permute.xlu2 %423 }
 0x445   : > { %v435_v32 = vsel %vm130_vm0, %v424_v31, %v376_v7 }
 0x446   : > { %462 = vrot.lane.b32.xlu2 %v435_v32, %s707_s19 }
 0x44b   : > { %v420_v33 = vpop.permute.xlu0 %419 }
 0x44c   : > { %v430_v34 = vpop.permute.xlu2 %429  ;;  %v433_v35 = vsel %vm130_vm0, %v420_v33, %v372_v4 }
 0x44d   : > { %v438_v36 = vsel %vm130_vm0, %v430_v34, %v382_v8  ;;  %458 = vrot.lane.b32.xlu0 %v433_v35, %s707_s19 }
 0x44e   : > { %468 = vrot.lane.b32.xlu2 %v438_v36, %s707_s19 }
 0x453   : > { %v426_v37 = vpop.permute.xlu0 %425 }
 0x454   : > { %v436_v38 = vsel %vm130_vm0, %v426_v37, %v378_v5 }
 0x455   : > { %464 = vrot.lane.b32.xlu0 %v436_v38, %s707_s19 }
 0x45b   : > { %v441_v45 = vpop.permute.xlu0 %440 }
 0x45c   : > { %vm442_vm5 = vcmp.eq.s32.totalorder %v791_v46, %v441_v45 }
 0x45d   : > { %v443_v47 = vsel %vm442_vm5, 1, %v703_v48 }
 0x45e   : > { %v444_v49 = vperm.slane %v443_v47, 0 }
 0x460   : > { %vm915_vm6 = vcmp.eq.s32.totalorder %v444_v49, 1 }
 0x463   : > { %v416_v39 = vpop.permute.xlu1 %415 }
 0x464   : > { %v431_v40 = vsel %vm130_vm0, %v416_v39, %v368_v10 }
 0x465   : > { %454 = vrot.lane.b32.xlu1 %v431_v40, %s707_s19 }
 0x46b   : > { %v422_v41 = vpop.permute.xlu1 %421 }
 0x46c   : > { %v434_v42 = vsel %vm130_vm0, %v422_v41, %v374_v11 }
 0x46d   : > { %460 = vrot.lane.b32.xlu1 %v434_v42, %s707_s19 }
 0x473   : > { %v428_v43 = vpop.permute.xlu1 %427 }
 0x474   : > { %v437_v44 = vsel %vm130_vm0, %v428_v43, %v380_v12 }
 0x475   : > { %466 = vrot.lane.b32.xlu1 %v437_v44, %s707_s19 }
 0x498   : > { %v457_v51 = vpop.permute.xlu2 %456 }
 0x499   : > { %v479_v52 = vsel %vm915_vm6, %v432_v30, %v457_v51 }
 0x49a   : > { %496 = vrot.lane.b32.xlu1 %v479_v52, %s708_s20 }
 0x4a0   : > { %v463_v53 = vpop.permute.xlu2 %462 }
 0x4a1   : > { %v482_v54 = vsel %vm915_vm6, %v435_v32, %v463_v53 }
 0x4a2   : > { %502 = vrot.lane.b32.xlu1 %v482_v54, %s708_s20 }
 0x4a8   : > { %v469_v55 = vpop.permute.xlu2 %468 }
 0x4a9   : > { %v485_v46 = vsel %vm915_vm6, %v438_v36, %v469_v55 }
 0x4aa   : > { %508 = vrot.lane.b32.xlu1 %v485_v46, %s708_s20 }
 0x4bf   : > { %v459_v48 = vpop.permute.xlu0 %458 }
 0x4c0   : > { %v480_v56 = vsel %vm915_vm6, %v433_v35, %v459_v48 }
 0x4c1   : > { %498 = vrot.lane.b32.xlu2 %v480_v56, %s708_s20 }
 0x4c7   : > { %v465_v57 = vpop.permute.xlu0 %464 }
 0x4c8   : > { %v483_v58 = vsel %vm915_vm6, %v436_v38, %v465_v57 }
 0x4c9   : > { %504 = vrot.lane.b32.xlu2 %v483_v58, %s708_s20 }
 0x4d7   : > { %v455_v59 = vpop.permute.xlu1 %454 }
 0x4d8   : > { %v478_v60 = vsel %vm915_vm6, %v431_v40, %v455_v59 }
 0x4d9   : > { %494 = vrot.lane.b32.xlu0 %v478_v60, %s708_s20 }
 0x4df   : > { %v461_v61 = vpop.permute.xlu1 %460 }
 0x4e0   : > { %v481_v62 = vsel %vm915_vm6, %v434_v42, %v461_v61 }
 0x4e1   : > { %500 = vrot.lane.b32.xlu0 %v481_v62, %s708_s20 }
 0x4e7   : > { %v467_v63 = vpop.permute.xlu1 %466 }
 0x4e8   : > { %v484_v0 = vsel %vm915_vm6, %v437_v44, %v467_v63 }
 0x4e9   : > { %506 = vrot.lane.b32.xlu0 %v484_v0, %s708_s20 }
 0x50c   : > { %v497_v1 = vpop.permute.xlu1 %496 }
 0x50d   : > { %521 = vrot.lane.b32.xlu0 %v497_v1, %s700_s13 }
 0x514   : > { %v503_v2 = vpop.permute.xlu1 %502 }
 0x515   : > { %530 = vrot.lane.b32.xlu0 %v503_v2, %s700_s13 }
 0x51b   : > { %v499_v3 = vpop.permute.xlu2 %498 }
 0x51c   : > { %v509_v4 = vpop.permute.xlu1 %508  ;;  %524 = vrot.lane.b32.xlu1 %v499_v3, %s700_s13 }
 0x51d   : > { %539 = vrot.lane.b32.xlu0 %v509_v4, %s700_s13 }
 0x523   : > { %v505_v5 = vpop.permute.xlu2 %504 }
 0x524   : > { %533 = vrot.lane.b32.xlu1 %v505_v5, %s700_s13 }
 0x54b   : > { %v495_v6 = vpop.permute.xlu0 %494 }
 0x54c   : > { %518 = vrot.lane.b32.xlu2 %v495_v6, %s700_s13 }
 0x553   : > { %v501_v7 = vpop.permute.xlu0 %500 }
 0x554   : > { %527 = vrot.lane.b32.xlu2 %v501_v7, %s700_s13 }
 0x55b   : > { %v507_v8 = vpop.permute.xlu0 %506 }
 0x55c   : > { %536 = vrot.lane.b32.xlu2 %v507_v8, %s700_s13 }
 0x57f   : > { %v522_v10 = vpop.permute.xlu0 %521 }
 0x580   : > { %v523_v11 = vsel %vm130_vm0, %v522_v10, %v497_v1 }
 0x581   : > { %544 = vrot.lane.b32.xlu2 %v523_v11, %s700_s13 }
 0x587   : > { %v531_v12 = vpop.permute.xlu0 %530 }
 0x588   : > { %v532_v13 = vsel %vm130_vm0, %v531_v12, %v503_v2 }
 0x589   : > { %550 = vrot.lane.b32.xlu2 %v532_v13, %s700_s13 }
 0x58e   : > { %v525_v14 = vpop.permute.xlu1 %524 }
 0x58f   : > { %v540_v15 = vpop.permute.xlu0 %539  ;;  %v526_v16 = vsel %vm130_vm0, %v525_v14, %v499_v3 }
 0x590   : > { %546 = vrot.lane.b32.xlu0 %v526_v16, %s700_s13  ;;  %v541_v17 = vsel %vm130_vm0, %v540_v15, %v509_v4 }
 0x591   : > { %556 = vrot.lane.b32.xlu2 %v541_v17, %s700_s13 }
 0x596   : > { %v534_v18 = vpop.permute.xlu1 %533 }
 0x597   : > { %v535_v19 = vsel %vm130_vm0, %v534_v18, %v505_v5 }
 0x598   : > { %552 = vrot.lane.b32.xlu0 %v535_v19, %s700_s13 }
 0x5a6   : > { %v519_v20 = vpop.permute.xlu2 %518 }
 0x5a7   : > { %v520_v21 = vsel %vm130_vm0, %v519_v20, %v495_v6 }
 0x5a8   : > { %542 = vrot.lane.b32.xlu1 %v520_v21, %s700_s13 }
 0x5ae   : > { %v528_v22 = vpop.permute.xlu2 %527 }
 0x5af   : > { %v529_v23 = vsel %vm130_vm0, %v528_v22, %v501_v7 }
 0x5b0   : > { %548 = vrot.lane.b32.xlu1 %v529_v23, %s700_s13 }
 0x5b6   : > { %v537_v24 = vpop.permute.xlu2 %536 }
 0x5b7   : > { %v538_v25 = vsel %vm130_vm0, %v537_v24, %v507_v8 }
 0x5b8   : > { %554 = vrot.lane.b32.xlu1 %v538_v25, %s700_s13 }
 0x5db   : > { %v545_v26 = vpop.permute.xlu2 %544 }
 0x5dc   : > { %v559_v9 = vsel %vm130_vm0, %v545_v26, %v497_v1 }
 0x5dd   : > { %576 = vrot.lane.b32.xlu1 %v559_v9, %s709_s21 }
 0x5e3   : > { %v551_v27 = vpop.permute.xlu2 %550 }
 0x5e4   : > { %v562_v28 = vsel %vm130_vm0, %v551_v27, %v503_v2 }
 0x5e5   : > { %582 = vrot.lane.b32.xlu1 %v562_v28, %s709_s21 }
 0x5eb   : > { %v557_v29 = vpop.permute.xlu2 %556 }
 0x5ec   : > { %v565_v30 = vsel %vm130_vm0, %v557_v29, %v509_v4 }
 0x5ed   : > { %588 = vrot.lane.b32.xlu1 %v565_v30, %s709_s21 }
 0x602   : > { %v547_v31 = vpop.permute.xlu0 %546 }
 0x603   : > { %v560_v32 = vsel %vm130_vm0, %v547_v31, %v499_v3 }
 0x604   : > { %578 = vrot.lane.b32.xlu2 %v560_v32, %s709_s21 }
 0x60a   : > { %v553_v33 = vpop.permute.xlu0 %552 }
 0x60b   : > { %v563_v34 = vsel %vm130_vm0, %v553_v33, %v505_v5 }
 0x60c   : > { %584 = vrot.lane.b32.xlu2 %v563_v34, %s709_s21 }
 0x61a   : > { %v543_v35 = vpop.permute.xlu1 %542 }
 0x61b   : > { %v558_v36 = vsel %vm130_vm0, %v543_v35, %v495_v6 }
 0x61c   : > { %574 = vrot.lane.b32.xlu0 %v558_v36, %s709_s21 }
 0x622   : > { %v549_v37 = vpop.permute.xlu1 %548 }
 0x623   : > { %v561_v38 = vsel %vm130_vm0, %v549_v37, %v501_v7 }
 0x624   : > { %580 = vrot.lane.b32.xlu0 %v561_v38, %s709_s21 }
 0x62a   : > { %v555_v39 = vpop.permute.xlu1 %554 }
 0x62b   : > { %v564_v40 = vsel %vm130_vm0, %v555_v39, %v507_v8 }
 0x62c   : > { %586 = vrot.lane.b32.xlu0 %v564_v40, %s709_s21 }
 0x64f   : > { %v577_v41 = vpop.permute.xlu1 %576 }
 0x650   : > { %600 = vst.msk [vmem:[%s118_s24 + $0x8] sm:$0xff] %vm598_vm7, %v577_v41 }
 0x657   : > { %v583_v42 = vpop.permute.xlu1 %582 }
 0x658   : > { %603 = vst.msk [vmem:[%s118_s24 + $0x20] sm:$0xff] %vm598_vm7, %v583_v42 }
 0x65e   : > { %v579_v43 = vpop.permute.xlu2 %578 }
 0x65f   : > { %v589_v44 = vpop.permute.xlu1 %588  ;;  %601 = vst.msk [vmem:[%s118_s24 + $0x10] sm:$0xff] %vm598_vm7, %v579_v43 }
 0x660   : > { %606 = vst.msk [vmem:[%s118_s24 + $0x38] sm:$0xff] %vm598_vm7, %v589_v44 }
 0x666   : > { %v585_v45 = vpop.permute.xlu2 %584 }
 0x667   : > { %604 = vst.msk [vmem:[%s118_s24 + $0x28] sm:$0xff] %vm598_vm7, %v585_v45 }
 0x68e   : > { %v575_v47 = vpop.permute.xlu0 %574 }
 0x68f   : > { %599 = vst.msk [vmem:[%s118_s24] sm:$0xff] %vm598_vm7, %v575_v47 }
 0x696   : > { %v581_v49 = vpop.permute.xlu0 %580 }
 0x697   : > { %602 = vst.msk [vmem:[%s118_s24 + $0x18] sm:$0xff] %vm598_vm7, %v581_v49 }
 0x69e   : > { %v587_v50 = vpop.permute.xlu0 %586 }
 0x69f   : > { %605 = vst.msk [vmem:[%s118_s24 + $0x30] sm:$0xff] %vm598_vm7, %v587_v50 }
 0x6a0 PF: > { %s11_s6 = sadd.s32 1, %s698_s6  }
 0x6a1   : > { %p8_p4 = scmp.ge.s32.totalorder %s11_s6, 4  }
 0x6a3   :  { %10 = sbr.rel (!%p8_p4) target bundleno = 1 (0x1), region = 54 }

</bundles_post_ra>
